<compile_context>
chip_gen: v7x
topology: tpu7x:2x2x1
jax: 0.10.0
libtpu: 0.0.40
codegen_flags: <defaults>
</compile_context>

<pallas_src>
import jax
import jax.numpy as jnp
from jax.experimental import pallas as pl
from jax.experimental.pallas import tpu as pltpu

LANES = 128


def mlp_kernel(w1_ref, b1_ref, w2_ref, b2_ref, w3_ref, b3_ref, x_ref, o_ref):
    # x_ref: (2, R, 128) VMEM tile -- batch laid out dense over (sublane, lane).
    # Weights/biases are SMEM-resident, PyTorch layout: W[out, in], b[out].
    x0 = x_ref[0]                                   # (R, 128)
    x1 = x_ref[1]                                   # (R, 128)

    # Layer 1: Linear(2, 4) + ReLU, unrolled scalar*tile MACs on the VPU.
    h1 = []
    for o in range(4):
        z = w1_ref[o, 0] * x0 + w1_ref[o, 1] * x1 + b1_ref[o]
        h1.append(jnp.maximum(z, 0.0))

    # Layer 2: Linear(4, 4) + ReLU.
    h2 = []
    for o in range(4):
        acc = w2_ref[o, 0] * h1[0]
        for i in range(1, 4):
            acc = acc + w2_ref[o, i] * h1[i]
        h2.append(jnp.maximum(acc + b2_ref[o], 0.0))

    # Layer 3: Linear(4, 1) + exact Sigmoid (exp on the EUP, exact divide).
    z = w3_ref[0, 0] * h2[0]
    for i in range(1, 4):
        z = z + w3_ref[0, i] * h2[i]
    z = z + b3_ref[0]
    o_ref[...] = 1.0 / (1.0 + jnp.exp(-z))          # (R, 128)


def mlp_forward(x, params, *, block_rows=64):
    """x: (B, 2) float32. Returns (B, 1) sigmoid outputs."""
    w1, b1, w2, b2, w3, b3 = [jnp.asarray(p, jnp.float32) for p in params]
    B = x.shape[0]

    rows = pl.cdiv(B, LANES)                         # 128 batch elements per row
    if rows <= block_rows:
        block_rows_eff = rows                        # single block == full extent
        rows_p = rows
    else:
        block_rows_eff = block_rows                  # multiple of 8 (sublane tiling)
        rows_p = pl.cdiv(rows, block_rows_eff) * block_rows_eff
    Bp = rows_p * LANES

    # Batch dense over (sublane, lane): (2, rows_p, 128).
    # TODO(synk): supply x pre-transposed/padded upstream to avoid this extra HBM pass.
    xp = jnp.zeros((Bp, 2), jnp.float32).at[:B].set(x.astype(jnp.float32))
    xt = xp.T.reshape(2, rows_p, LANES)

    smem = pl.BlockSpec(memory_space=pltpu.MemorySpace.SMEM)
    out = pl.pallas_call(
        mlp_kernel,
        out_shape=jax.ShapeDtypeStruct((rows_p, LANES), jnp.float32),
        grid=(rows_p // block_rows_eff,),
        in_specs=[
            smem, smem,                              # w1, b1 (resident across steps)
            smem, smem,                              # w2, b2
            smem, smem,                              # w3, b3
            pl.BlockSpec((2, block_rows_eff, LANES), lambda i: (0, i, 0)),
        ],
        out_specs=pl.BlockSpec((block_rows_eff, LANES), lambda i: (i, 0)),
        compiler_params=pltpu.CompilerParams(
            dimension_semantics=("parallel",)),      # v7x: shard steps across both TCs
    )(w1, b1, w2, b2, w3, b3, xt)

    return out.reshape(Bp)[:B].reshape(B, 1)


def init_params(key):
    # Deterministic init mimicking nn.Linear's U(-1/sqrt(fan_in), 1/sqrt(fan_in)),
    # stored in PyTorch layout: W (out_features, in_features), b (out_features,).
    def linear(key, fan_in, fan_out):
        kw, kb = jax.random.split(key)
        bound = 1.0 / jnp.sqrt(fan_in)
        w = jax.random.uniform(kw, (fan_out, fan_in), jnp.float32, -bound, bound)
        b = jax.random.uniform(kb, (fan_out,), jnp.float32, -bound, bound)
        return w, b

    k1, k2, k3 = jax.random.split(key, 3)
    w1, b1 = linear(k1, 2, 4)
    w2, b2 = linear(k2, 4, 4)
    w3, b3 = linear(k3, 4, 1)
    return w1, b1, w2, b2, w3, b3


def reference_forward(x, params):
    w1, b1, w2, b2, w3, b3 = params
    h = jnp.maximum(x @ w1.T + b1, 0.0)
    h = jnp.maximum(h @ w2.T + b2, 0.0)
    return jax.nn.sigmoid(h @ w3.T + b3)


if __name__ == "__main__":
    key = jax.random.PRNGKey(0)
    kx, kp = jax.random.split(key)

    B = 512                                               # 4 rows of 128 -> one dense tile
    x = jax.random.normal(kx, (B, 2), dtype=jnp.float32)  # (batch, in_features=2)
    params = init_params(kp)

    out = mlp_forward(x, params)
    out = jax.block_until_ready(out)

    ref = reference_forward(x, params)
    assert out.shape == (B, 1)
    assert jnp.allclose(out, ref, atol=1e-5, rtol=1e-5), "mismatch vs. reference"

    # predict() equivalent (threshold at 0.5), plain JAX glue:
    _pred = (out[:, 0] >= 0.5).astype(jnp.float32)

    print("KERNEL_OK")
</pallas_src>

<mosaic_0001>
module attributes {stable_mosaic.version = 11 : i64} {
  func.func @mlp_kernel(%arg0: i32, %arg1: memref<4x2xf32, #tpu.memory_space<smem>>, %arg2: memref<4xf32, #tpu.memory_space<smem>>, %arg3: memref<4x4xf32, #tpu.memory_space<smem>>, %arg4: memref<4xf32, #tpu.memory_space<smem>>, %arg5: memref<1x4xf32, #tpu.memory_space<smem>>, %arg6: memref<1xf32, #tpu.memory_space<smem>>, %arg7: memref<2x4x128xf32, #tpu.memory_space<vmem>>, %arg8: memref<4x128xf32, #tpu.memory_space<vmem>>) attributes {dimension_semantics = [#tpu.dimension_semantics<parallel>], iteration_bounds = array<i64: 1>, scalar_prefetch = 0 : i64, scratch_operands = 0 : i64, tpu.core_type = #tpu.core_type<tc>, window_params = [{transform_indices = @transform_0, window_bounds = array<i64: 4, 2>}, {transform_indices = @transform_1, window_bounds = array<i64: 4>}, {transform_indices = @transform_2, window_bounds = array<i64: 4, 4>}, {transform_indices = @transform_3, window_bounds = array<i64: 4>}, {transform_indices = @transform_4, window_bounds = array<i64: 1, 4>}, {transform_indices = @transform_5, window_bounds = array<i64: 1>}, {transform_indices = @transform_6, window_bounds = array<i64: 2, 4, 128>}, {transform_indices = @transform_7, window_bounds = array<i64: 4, 128>}]} {
    %c0 = arith.constant 0 : index
    %c0_0 = arith.constant 0 : index
    %c0_1 = arith.constant 0 : index
    %0 = vector.load %arg7[%c0, %c0_0, %c0_1] : memref<2x4x128xf32, #tpu.memory_space<vmem>>, vector<1x4x128xf32>
    %1 = vector.shape_cast %0 : vector<1x4x128xf32> to vector<4x128xf32>
    %c1 = arith.constant 1 : index
    %c0_2 = arith.constant 0 : index
    %c0_3 = arith.constant 0 : index
    %2 = vector.load %arg7[%c1, %c0_2, %c0_3] : memref<2x4x128xf32, #tpu.memory_space<vmem>>, vector<1x4x128xf32>
    %3 = vector.shape_cast %2 : vector<1x4x128xf32> to vector<4x128xf32>
    %c0_4 = arith.constant 0 : index
    %c0_5 = arith.constant 0 : index
    %4 = memref.load %arg1[%c0_4, %c0_5] : memref<4x2xf32, #tpu.memory_space<smem>>
    %5 = vector.broadcast %4 : f32 to vector<4x128xf32>
    %6 = arith.mulf %5, %1 : vector<4x128xf32>
    %c0_6 = arith.constant 0 : index
    %c1_7 = arith.constant 1 : index
    %7 = memref.load %arg1[%c0_6, %c1_7] : memref<4x2xf32, #tpu.memory_space<smem>>
    %8 = vector.broadcast %7 : f32 to vector<4x128xf32>
    %9 = arith.mulf %8, %3 : vector<4x128xf32>
    %10 = arith.addf %6, %9 : vector<4x128xf32>
    %c0_8 = arith.constant 0 : index
    %11 = memref.load %arg2[%c0_8] : memref<4xf32, #tpu.memory_space<smem>>
    %12 = vector.broadcast %11 : f32 to vector<4x128xf32>
    %13 = arith.addf %10, %12 : vector<4x128xf32>
    %cst = arith.constant 0.000000e+00 : f32
    %14 = vector.broadcast %cst : f32 to vector<4x128xf32>
    %15 = arith.maximumf %13, %14 : vector<4x128xf32>
    %c1_9 = arith.constant 1 : index
    %c0_10 = arith.constant 0 : index
    %16 = memref.load %arg1[%c1_9, %c0_10] : memref<4x2xf32, #tpu.memory_space<smem>>
    %17 = vector.broadcast %16 : f32 to vector<4x128xf32>
    %18 = arith.mulf %17, %1 : vector<4x128xf32>
    %c1_11 = arith.constant 1 : index
    %c1_12 = arith.constant 1 : index
    %19 = memref.load %arg1[%c1_11, %c1_12] : memref<4x2xf32, #tpu.memory_space<smem>>
    %20 = vector.broadcast %19 : f32 to vector<4x128xf32>
    %21 = arith.mulf %20, %3 : vector<4x128xf32>
    %22 = arith.addf %18, %21 : vector<4x128xf32>
    %c1_13 = arith.constant 1 : index
    %23 = memref.load %arg2[%c1_13] : memref<4xf32, #tpu.memory_space<smem>>
    %24 = vector.broadcast %23 : f32 to vector<4x128xf32>
    %25 = arith.addf %22, %24 : vector<4x128xf32>
    %cst_14 = arith.constant 0.000000e+00 : f32
    %26 = vector.broadcast %cst_14 : f32 to vector<4x128xf32>
    %27 = arith.maximumf %25, %26 : vector<4x128xf32>
    %c2 = arith.constant 2 : index
    %c0_15 = arith.constant 0 : index
    %28 = memref.load %arg1[%c2, %c0_15] : memref<4x2xf32, #tpu.memory_space<smem>>
    %29 = vector.broadcast %28 : f32 to vector<4x128xf32>
    %30 = arith.mulf %29, %1 : vector<4x128xf32>
    %c2_16 = arith.constant 2 : index
    %c1_17 = arith.constant 1 : index
    %31 = memref.load %arg1[%c2_16, %c1_17] : memref<4x2xf32, #tpu.memory_space<smem>>
    %32 = vector.broadcast %31 : f32 to vector<4x128xf32>
    %33 = arith.mulf %32, %3 : vector<4x128xf32>
    %34 = arith.addf %30, %33 : vector<4x128xf32>
    %c2_18 = arith.constant 2 : index
    %35 = memref.load %arg2[%c2_18] : memref<4xf32, #tpu.memory_space<smem>>
    %36 = vector.broadcast %35 : f32 to vector<4x128xf32>
    %37 = arith.addf %34, %36 : vector<4x128xf32>
    %cst_19 = arith.constant 0.000000e+00 : f32
    %38 = vector.broadcast %cst_19 : f32 to vector<4x128xf32>
    %39 = arith.maximumf %37, %38 : vector<4x128xf32>
    %c3 = arith.constant 3 : index
    %c0_20 = arith.constant 0 : index
    %40 = memref.load %arg1[%c3, %c0_20] : memref<4x2xf32, #tpu.memory_space<smem>>
    %41 = vector.broadcast %40 : f32 to vector<4x128xf32>
    %42 = arith.mulf %41, %1 : vector<4x128xf32>
    %c3_21 = arith.constant 3 : index
    %c1_22 = arith.constant 1 : index
    %43 = memref.load %arg1[%c3_21, %c1_22] : memref<4x2xf32, #tpu.memory_space<smem>>
    %44 = vector.broadcast %43 : f32 to vector<4x128xf32>
    %45 = arith.mulf %44, %3 : vector<4x128xf32>
    %46 = arith.addf %42, %45 : vector<4x128xf32>
    %c3_23 = arith.constant 3 : index
    %47 = memref.load %arg2[%c3_23] : memref<4xf32, #tpu.memory_space<smem>>
    %48 = vector.broadcast %47 : f32 to vector<4x128xf32>
    %49 = arith.addf %46, %48 : vector<4x128xf32>
    %cst_24 = arith.constant 0.000000e+00 : f32
    %50 = vector.broadcast %cst_24 : f32 to vector<4x128xf32>
    %51 = arith.maximumf %49, %50 : vector<4x128xf32>
    %c0_25 = arith.constant 0 : index
    %c0_26 = arith.constant 0 : index
    %52 = memref.load %arg3[%c0_25, %c0_26] : memref<4x4xf32, #tpu.memory_space<smem>>
    %53 = vector.broadcast %52 : f32 to vector<4x128xf32>
    %54 = arith.mulf %53, %15 : vector<4x128xf32>
    %c0_27 = arith.constant 0 : index
    %c1_28 = arith.constant 1 : index
    %55 = memref.load %arg3[%c0_27, %c1_28] : memref<4x4xf32, #tpu.memory_space<smem>>
    %56 = vector.broadcast %55 : f32 to vector<4x128xf32>
    %57 = arith.mulf %56, %27 : vector<4x128xf32>
    %58 = arith.addf %54, %57 : vector<4x128xf32>
    %c0_29 = arith.constant 0 : index
    %c2_30 = arith.constant 2 : index
    %59 = memref.load %arg3[%c0_29, %c2_30] : memref<4x4xf32, #tpu.memory_space<smem>>
    %60 = vector.broadcast %59 : f32 to vector<4x128xf32>
    %61 = arith.mulf %60, %39 : vector<4x128xf32>
    %62 = arith.addf %58, %61 : vector<4x128xf32>
    %c0_31 = arith.constant 0 : index
    %c3_32 = arith.constant 3 : index
    %63 = memref.load %arg3[%c0_31, %c3_32] : memref<4x4xf32, #tpu.memory_space<smem>>
    %64 = vector.broadcast %63 : f32 to vector<4x128xf32>
    %65 = arith.mulf %64, %51 : vector<4x128xf32>
    %66 = arith.addf %62, %65 : vector<4x128xf32>
    %c0_33 = arith.constant 0 : index
    %67 = memref.load %arg4[%c0_33] : memref<4xf32, #tpu.memory_space<smem>>
    %68 = vector.broadcast %67 : f32 to vector<4x128xf32>
    %69 = arith.addf %66, %68 : vector<4x128xf32>
    %cst_34 = arith.constant 0.000000e+00 : f32
    %70 = vector.broadcast %cst_34 : f32 to vector<4x128xf32>
    %71 = arith.maximumf %69, %70 : vector<4x128xf32>
    %c1_35 = arith.constant 1 : index
    %c0_36 = arith.constant 0 : index
    %72 = memref.load %arg3[%c1_35, %c0_36] : memref<4x4xf32, #tpu.memory_space<smem>>
    %73 = vector.broadcast %72 : f32 to vector<4x128xf32>
    %74 = arith.mulf %73, %15 : vector<4x128xf32>
    %c1_37 = arith.constant 1 : index
    %c1_38 = arith.constant 1 : index
    %75 = memref.load %arg3[%c1_37, %c1_38] : memref<4x4xf32, #tpu.memory_space<smem>>
    %76 = vector.broadcast %75 : f32 to vector<4x128xf32>
    %77 = arith.mulf %76, %27 : vector<4x128xf32>
    %78 = arith.addf %74, %77 : vector<4x128xf32>
    %c1_39 = arith.constant 1 : index
    %c2_40 = arith.constant 2 : index
    %79 = memref.load %arg3[%c1_39, %c2_40] : memref<4x4xf32, #tpu.memory_space<smem>>
    %80 = vector.broadcast %79 : f32 to vector<4x128xf32>
    %81 = arith.mulf %80, %39 : vector<4x128xf32>
    %82 = arith.addf %78, %81 : vector<4x128xf32>
    %c1_41 = arith.constant 1 : index
    %c3_42 = arith.constant 3 : index
    %83 = memref.load %arg3[%c1_41, %c3_42] : memref<4x4xf32, #tpu.memory_space<smem>>
    %84 = vector.broadcast %83 : f32 to vector<4x128xf32>
    %85 = arith.mulf %84, %51 : vector<4x128xf32>
    %86 = arith.addf %82, %85 : vector<4x128xf32>
    %c1_43 = arith.constant 1 : index
    %87 = memref.load %arg4[%c1_43] : memref<4xf32, #tpu.memory_space<smem>>
    %88 = vector.broadcast %87 : f32 to vector<4x128xf32>
    %89 = arith.addf %86, %88 : vector<4x128xf32>
    %cst_44 = arith.constant 0.000000e+00 : f32
    %90 = vector.broadcast %cst_44 : f32 to vector<4x128xf32>
    %91 = arith.maximumf %89, %90 : vector<4x128xf32>
    %c2_45 = arith.constant 2 : index
    %c0_46 = arith.constant 0 : index
    %92 = memref.load %arg3[%c2_45, %c0_46] : memref<4x4xf32, #tpu.memory_space<smem>>
    %93 = vector.broadcast %92 : f32 to vector<4x128xf32>
    %94 = arith.mulf %93, %15 : vector<4x128xf32>
    %c2_47 = arith.constant 2 : index
    %c1_48 = arith.constant 1 : index
    %95 = memref.load %arg3[%c2_47, %c1_48] : memref<4x4xf32, #tpu.memory_space<smem>>
    %96 = vector.broadcast %95 : f32 to vector<4x128xf32>
    %97 = arith.mulf %96, %27 : vector<4x128xf32>
    %98 = arith.addf %94, %97 : vector<4x128xf32>
    %c2_49 = arith.constant 2 : index
    %c2_50 = arith.constant 2 : index
    %99 = memref.load %arg3[%c2_49, %c2_50] : memref<4x4xf32, #tpu.memory_space<smem>>
    %100 = vector.broadcast %99 : f32 to vector<4x128xf32>
    %101 = arith.mulf %100, %39 : vector<4x128xf32>
    %102 = arith.addf %98, %101 : vector<4x128xf32>
    %c2_51 = arith.constant 2 : index
    %c3_52 = arith.constant 3 : index
    %103 = memref.load %arg3[%c2_51, %c3_52] : memref<4x4xf32, #tpu.memory_space<smem>>
    %104 = vector.broadcast %103 : f32 to vector<4x128xf32>
    %105 = arith.mulf %104, %51 : vector<4x128xf32>
    %106 = arith.addf %102, %105 : vector<4x128xf32>
    %c2_53 = arith.constant 2 : index
    %107 = memref.load %arg4[%c2_53] : memref<4xf32, #tpu.memory_space<smem>>
    %108 = vector.broadcast %107 : f32 to vector<4x128xf32>
    %109 = arith.addf %106, %108 : vector<4x128xf32>
    %cst_54 = arith.constant 0.000000e+00 : f32
    %110 = vector.broadcast %cst_54 : f32 to vector<4x128xf32>
    %111 = arith.maximumf %109, %110 : vector<4x128xf32>
    %c3_55 = arith.constant 3 : index
    %c0_56 = arith.constant 0 : index
    %112 = memref.load %arg3[%c3_55, %c0_56] : memref<4x4xf32, #tpu.memory_space<smem>>
    %113 = vector.broadcast %112 : f32 to vector<4x128xf32>
    %114 = arith.mulf %113, %15 : vector<4x128xf32>
    %c3_57 = arith.constant 3 : index
    %c1_58 = arith.constant 1 : index
    %115 = memref.load %arg3[%c3_57, %c1_58] : memref<4x4xf32, #tpu.memory_space<smem>>
    %116 = vector.broadcast %115 : f32 to vector<4x128xf32>
    %117 = arith.mulf %116, %27 : vector<4x128xf32>
    %118 = arith.addf %114, %117 : vector<4x128xf32>
    %c3_59 = arith.constant 3 : index
    %c2_60 = arith.constant 2 : index
    %119 = memref.load %arg3[%c3_59, %c2_60] : memref<4x4xf32, #tpu.memory_space<smem>>
    %120 = vector.broadcast %119 : f32 to vector<4x128xf32>
    %121 = arith.mulf %120, %39 : vector<4x128xf32>
    %122 = arith.addf %118, %121 : vector<4x128xf32>
    %c3_61 = arith.constant 3 : index
    %c3_62 = arith.constant 3 : index
    %123 = memref.load %arg3[%c3_61, %c3_62] : memref<4x4xf32, #tpu.memory_space<smem>>
    %124 = vector.broadcast %123 : f32 to vector<4x128xf32>
    %125 = arith.mulf %124, %51 : vector<4x128xf32>
    %126 = arith.addf %122, %125 : vector<4x128xf32>
    %c3_63 = arith.constant 3 : index
    %127 = memref.load %arg4[%c3_63] : memref<4xf32, #tpu.memory_space<smem>>
    %128 = vector.broadcast %127 : f32 to vector<4x128xf32>
    %129 = arith.addf %126, %128 : vector<4x128xf32>
    %cst_64 = arith.constant 0.000000e+00 : f32
    %130 = vector.broadcast %cst_64 : f32 to vector<4x128xf32>
    %131 = arith.maximumf %129, %130 : vector<4x128xf32>
    %c0_65 = arith.constant 0 : index
    %c0_66 = arith.constant 0 : index
    %132 = memref.load %arg5[%c0_65, %c0_66] : memref<1x4xf32, #tpu.memory_space<smem>>
    %133 = vector.broadcast %132 : f32 to vector<4x128xf32>
    %134 = arith.mulf %133, %71 : vector<4x128xf32>
    %c0_67 = arith.constant 0 : index
    %c1_68 = arith.constant 1 : index
    %135 = memref.load %arg5[%c0_67, %c1_68] : memref<1x4xf32, #tpu.memory_space<smem>>
    %136 = vector.broadcast %135 : f32 to vector<4x128xf32>
    %137 = arith.mulf %136, %91 : vector<4x128xf32>
    %138 = arith.addf %134, %137 : vector<4x128xf32>
    %c0_69 = arith.constant 0 : index
    %c2_70 = arith.constant 2 : index
    %139 = memref.load %arg5[%c0_69, %c2_70] : memref<1x4xf32, #tpu.memory_space<smem>>
    %140 = vector.broadcast %139 : f32 to vector<4x128xf32>
    %141 = arith.mulf %140, %111 : vector<4x128xf32>
    %142 = arith.addf %138, %141 : vector<4x128xf32>
    %c0_71 = arith.constant 0 : index
    %c3_72 = arith.constant 3 : index
    %143 = memref.load %arg5[%c0_71, %c3_72] : memref<1x4xf32, #tpu.memory_space<smem>>
    %144 = vector.broadcast %143 : f32 to vector<4x128xf32>
    %145 = arith.mulf %144, %131 : vector<4x128xf32>
    %146 = arith.addf %142, %145 : vector<4x128xf32>
    %c0_73 = arith.constant 0 : index
    %147 = memref.load %arg6[%c0_73] : memref<1xf32, #tpu.memory_space<smem>>
    %148 = vector.broadcast %147 : f32 to vector<4x128xf32>
    %149 = arith.addf %146, %148 : vector<4x128xf32>
    %cst_74 = arith.constant 0.000000e+00 : f32
    %150 = vector.broadcast %cst_74 : f32 to vector<4x128xf32>
    %151 = arith.subf %150, %149 : vector<4x128xf32>
    %152 = math.exp %151 : vector<4x128xf32>
    %cst_75 = arith.constant 1.000000e+00 : f32
    %153 = vector.broadcast %cst_75 : f32 to vector<4x128xf32>
    %154 = arith.addf %153, %152 : vector<4x128xf32>
    %cst_76 = arith.constant 1.000000e+00 : f32
    %155 = vector.broadcast %cst_76 : f32 to vector<4x128xf32>
    %156 = arith.divf %155, %154 : vector<4x128xf32>
    %c0_77 = arith.constant 0 : index
    %c0_78 = arith.constant 0 : index
    %157 = vector.load %arg8[%c0_77, %c0_78] : memref<4x128xf32, #tpu.memory_space<vmem>>, vector<4x128xf32>
    tpu.vector_store %arg8[%c0_77, %c0_78], %156 {strides = array<i32>} : memref<4x128xf32, #tpu.memory_space<vmem>>, vector<4x128xf32>,
    return
  }
  func.func @transform_0(%arg0: i32) -> (i32, i32) {
    %c0_i32 = arith.constant 0 : i32
    %c0_i32_0 = arith.constant 0 : i32
    %c0_i32_1 = arith.constant 0 : i32
    return %c0_i32, %c0_i32_0 : i32, i32
  }
  func.func @transform_1(%arg0: i32) -> i32 {
    %c0_i32 = arith.constant 0 : i32
    %c0_i32_0 = arith.constant 0 : i32
    return %c0_i32 : i32
  }
  func.func @transform_2(%arg0: i32) -> (i32, i32) {
    %c0_i32 = arith.constant 0 : i32
    %c0_i32_0 = arith.constant 0 : i32
    %c0_i32_1 = arith.constant 0 : i32
    return %c0_i32, %c0_i32_0 : i32, i32
  }
  func.func @transform_3(%arg0: i32) -> i32 {
    %c0_i32 = arith.constant 0 : i32
    %c0_i32_0 = arith.constant 0 : i32
    return %c0_i32 : i32
  }
  func.func @transform_4(%arg0: i32) -> (i32, i32) {
    %c0_i32 = arith.constant 0 : i32
    %c0_i32_0 = arith.constant 0 : i32
    %c0_i32_1 = arith.constant 0 : i32
    return %c0_i32, %c0_i32_0 : i32, i32
  }
  func.func @transform_5(%arg0: i32) -> i32 {
    %c0_i32 = arith.constant 0 : i32
    %c0_i32_0 = arith.constant 0 : i32
    return %c0_i32 : i32
  }
  func.func @transform_6(%arg0: i32) -> (i32, i32, i32) {
    %c0_i32 = arith.constant 0 : i32
    %c0_i32_0 = arith.constant 0 : i32
    %c0_i32_1 = arith.constant 0 : i32
    return %c0_i32, %arg0, %c0_i32_0 : i32, i32, i32
  }
  func.func @transform_7(%arg0: i32) -> (i32, i32) {
    %c0_i32 = arith.constant 0 : i32
    %c0_i32_0 = arith.constant 0 : i32
    return %arg0, %c0_i32 : i32, i32
  }
}

</mosaic_0001>

<bundles_post_ra>
// kernel: tpu_custom_call.1
= control target key start
LH: loop header
LB: loop body
LE: loop exit
PB: predicated region body
PF: predicated region fallthrough
CT: control target
= control target key end

     0   :  { %13 = vsyncpa [#allocation5], 0  ;;  %s553_s0 = inlined_call_operand.vmem [shape: f32[4,2], index: 0, kind: input, shape index: {}]   ;;  %s554_s1 = inlined_call_operand.vmem [shape: f32[4], index: 1, kind: input, shape index: {}]   ;;  %s555_s2 = inlined_call_operand.vmem [shape: f32[4,4], index: 2, kind: input, shape index: {}]   ;;  %s556_s3 = inlined_call_operand.vmem [shape: f32[4], index: 3, kind: input, shape index: {}]   ;;  %s557_s4 = inlined_call_operand.vmem [shape: f32[1,4], index: 4, kind: input, shape index: {}]   ;;  %s558_s5 = inlined_call_operand.<no memory space> [shape: f32[1], index: 5, kind: input, shape index: {}]   ;;  %s559_s6 = inlined_call_operand.vmem [shape: f32[2,4,128], index: 6, kind: input, shape index: {}]   ;;  %s560_s7 = inlined_call_operand.hbm [shape: f32[4,128], index: 7, kind: output, shape index: {}]  }
   0x1   :  { %14 = vsyncpa [#allocation7], 0 }
   0x2   :  { %15 = vsyncpa [#allocation10], 0  ;;  %s33_s26 = sshll.u32 %s554_s1, 4  ;;  %s34_s26 = int_to_ptr.vmem [resolvable:$true] %s33_s26 }
   0x3   :  { %16 = vsyncpa [#allocation4], 0  ;;  %s53_s29 = sshll.u32 %s556_s3, 4  ;;  %s294_s30 = scalar_lea.vmem %s34_s26, 16  ;;  %s54_s29 = int_to_ptr.vmem [resolvable:$true] %s53_s29 }
   0x4   :  { %p295_p0 = scmp.ne.s32.totalorder %s34_s26, %s294_s30  ;;  %p299_p1 = scmp.lt.s32.totalorder %s34_s26, %s34_s26 }
   0x5   :  { %p300_p2 = scmp.lt.s32.totalorder %s294_s30, %s294_s30 }
   0x7   :  { %p301_p3 = por %p300_p2, %p299_p1 }
   0x9   :  { %p302_p4 = pnand %p301_p3, %p295_p0 }
   0xb   :  { %305 = shalt.err (!%p302_p4)
}
   0xc   :  { %s384_s8 = smov [#allocation6]   ;;  %s306_s9 = scalar_lea.vmem %s54_s29, 16 }
   0xd   :  { %36 = dma.vmem_to_smem %s34_s26, 16, %s384_s8, [#allocation7]  }
   0xe   :  { %p307_p5 = scmp.ne.s32.totalorder %s54_s29, %s306_s9  ;;  %p311_p6 = scmp.lt.s32.totalorder %s54_s29, %s54_s29 }
   0xf   :  { %p312_p7 = scmp.lt.s32.totalorder %s306_s9, %s306_s9 }
  0x11   :  { %p313_p8 = por %p312_p7, %p311_p6 }
  0x13   :  { %p314_p9 = pnand %p313_p8, %p307_p5 }
  0x15   :  { %317 = shalt.err (!%p314_p9)
}
  0x16   :  { %s385_s1 = smov [#allocation9]   ;;  %s23_s11 = sshll.u32 %s553_s0, 4  ;;  %s24_s11 = int_to_ptr.vmem [resolvable:$true] %s23_s11 }
  0x17   :  { %56 = dma.vmem_to_smem %s54_s29, 16, %s385_s1, [#allocation10]  }
  0x18   :  { %s43_s14 = sshll.u32 %s555_s2, 4  ;;  %s318_s15 = scalar_lea.vmem %s24_s11, 64  ;;  %s44_s14 = int_to_ptr.vmem [resolvable:$true] %s43_s14 }
  0x19   :  { %p319_p10 = scmp.ne.s32.totalorder %s24_s11, %s318_s15  ;;  %p323_p11 = scmp.lt.s32.totalorder %s24_s11, %s24_s11 }
  0x1a   :  { %p324_p12 = scmp.lt.s32.totalorder %s318_s15, %s318_s15 }
  0x1c   :  { %p325_p13 = por %p324_p12, %p323_p11 }
  0x1e   :  { %p326_p0 = pnand %p325_p13, %p319_p10 }
  0x20   :  { %329 = shalt.err (!%p326_p0)
}
  0x21   :  { %s386_s16 = smov [#allocation3]   ;;  %s330_s17 = scalar_lea.vmem %s44_s14, 64 }
  0x22   :  { %26 = dma.vmem_to_smem %s24_s11, 64, %s386_s16, [#allocation5]  }
  0x23   :  { %p331_p1 = scmp.ne.s32.totalorder %s44_s14, %s330_s17  ;;  %p335_p2 = scmp.lt.s32.totalorder %s44_s14, %s44_s14 }
  0x24   :  { %p336_p3 = scmp.lt.s32.totalorder %s330_s17, %s330_s17 }
  0x26   :  { %p337_p4 = por %p336_p3, %p335_p2 }
  0x28   :  { %p338_p5 = pnand %p337_p4, %p331_p1 }
  0x2a   :  { %341 = shalt.err (!%p338_p5)
}
  0x2b   :  { %s387_s0 = smov [#allocation8]   ;;  %s63_s19 = sshll.u32 %s557_s4, 4  ;;  %s64_s19 = int_to_ptr.vmem [resolvable:$true] %s63_s19 }
  0x2c   :  { %46 = dma.vmem_to_smem %s44_s14, 64, %s387_s0, [#allocation7]  }
  0x2d   :  { %s342_s20 = scalar_lea.vmem %s64_s19, 16  ;;  %p347_p7 = scmp.lt.s32.totalorder %s64_s19, %s64_s19 }
  0x2e   :  { %p343_p6 = scmp.ne.s32.totalorder %s64_s19, %s342_s20  ;;  %p348_p8 = scmp.lt.s32.totalorder %s342_s20, %s342_s20 }
  0x30   :  { %p349_p9 = por %p348_p8, %p347_p7 }
  0x32   :  { %p350_p10 = pnand %p349_p9, %p343_p6 }
  0x34   :  { %353 = shalt.err (!%p350_p10)
}
  0x35   :  { %s388_s21 = smov [#allocation11]  }
  0x36   :  { %66 = dma.vmem_to_smem %s64_s19, 16, %s388_s21, [#allocation10]  }
  0x37   :  { %376 = dma.done.wait [#allocation5], 64  }
  0x38   :  { %377 = vsyncadd [#allocation5], 4294967232 }
  0x39   :  { %378 = dma.done.wait [#allocation7], 80  }
  0x3a   :  { %379 = vsyncadd [#allocation7], 4294967216 }
  0x3b   :  { %380 = dma.done.wait [#allocation10], 32  }
  0x3c   :  { %381 = vsyncadd [#allocation10], 4294967264 }
  0x3d   :  { %86 = sfence }
  0x3e   :  { %s90_s22 = sld [smem:[#allocation3]]  ;;  %s253_s23 = sld [smem:[#allocation3 + $0x1]]  ;;  %v87_v0 = vld [vmem:[%s559_s6] sm:$0xf]  ;;  %v252_v1 = vld [vmem:[%s559_s6 + $0x4] sm:$0xf] }
  0x3f   :  { %s445_s4 = sld [smem:[#allocation6]]  ;;  %s255_s25 = sld [smem:[#allocation3 + $0x81]] }
  0x40   :  { %s254_s24 = sld [smem:[#allocation3 + $0x80]]  ;;  %s447_s26 = sld [smem:[#allocation6 + $0x1]] }
  0x41   :  { %s257_s27 = sld [smem:[#allocation3 + $0x100]]  ;;  %s258_s30 = sld [smem:[#allocation3 + $0x101]] }
  0x42   :  { %s452_s8 = sld [smem:[#allocation6 + $0x2]]  ;;  %s457_s3 = sld [smem:[#allocation3 + $0x180]] }
  0x43   :  { %s459_s10 = sld [smem:[#allocation3 + $0x181]]  ;;  %s461_s11 = sld [smem:[#allocation6 + $0x3]] }
  0x44   :  { %v91_v2 = vstv %s90_s22  ;;  %s463_s12 = sld [smem:[#allocation8]]  ;;  %v94_v4 = vstv %s253_s23  ;;  %s465_s13 = sld [smem:[#allocation8 + $0x1]] }
  0x45   :  { %v92_v3 = vmul.f32 %v91_v2, %v87_v0  ;;  %s467_s14 = sld [smem:[#allocation8 + $0x2]]  ;;  %v95_v5 = vmul.f32 %v252_v1, %v94_v4  ;;  %v105_v7 = vstv %s255_s25  ;;  %s469_s6 = sld [smem:[#allocation8 + $0x3]]  ;;  %v98_v8 = vstv %s445_s4 }
  0x46   :  { %v102_v6 = vstv %s254_s24  ;;  %s471_s15 = sld [smem:[#allocation9]]  ;;  %v106_v10 = vmul.f32 %v252_v1, %v105_v7  ;;  %s476_s17 = sld [smem:[#allocation8 + $0x81]]  ;;  %v109_v13 = vstv %s447_s26 }
  0x47   :  { %v103_v9 = vmul.f32 %v102_v6, %v87_v0  ;;  %v113_v11 = vstv %s257_s27  ;;  %s474_s16 = sld [smem:[#allocation8 + $0x80]]  ;;  %v96_v12 = vadd.f32 %v95_v5, %v92_v3  ;;  %v116_v15 = vstv %s258_s30  ;;  %s479_s0 = sld [smem:[#allocation8 + $0x82]] }
  0x48   :  { %v114_v14 = vmul.f32 %v113_v11, %v87_v0  ;;  %s481_s2 = sld [smem:[#allocation8 + $0x83]]  ;;  %v117_v17 = vmul.f32 %v252_v1, %v116_v15  ;;  %v124_v18 = vstv %s457_s3  ;;  %s485_s18 = sld [smem:[#allocation8 + $0x100]]  ;;  %v120_v21 = vstv %s452_s8 }
  0x49   :  { %v107_v16 = vadd.f32 %v106_v10, %v103_v9  ;;  %v127_v19 = vstv %s459_s10  ;;  %v99_v20 = vadd.f32 %v98_v8, %v96_v12  ;;  %v125_v22 = vmul.f32 %v124_v18, %v87_v0  ;;  %s488_s19 = sld [smem:[#allocation8 + $0x101]]  ;;  %s494_s21 = sld [smem:[#allocation8 + $0x102]] }
  0x4a   :  { %v128_v23 = vmul.f32 %v252_v1, %v127_v19  ;;  %v118_v25 = vadd.f32 %v117_v17, %v114_v14  ;;  %v131_v26 = vstv %s461_s11  ;;  %v135_v27 = vstv %s463_s12  ;;  %s492_s20 = sld [smem:[#allocation9 + $0x1]]  ;;  %s498_s22 = sld [smem:[#allocation8 + $0x103]] }
  0x4b   :  { %v110_v24 = vadd.f32 %v109_v13, %v107_v16  ;;  %v100_v28 = vmax.f32 %v99_v20, 0.0  ;;  %v138_v30 = vstv %s465_s13  ;;  %v142_v31 = vstv %s467_s14  ;;  %s500_s23 = sld [smem:[#allocation8 + $0x180]]  ;;  %s504_s4 = sld [smem:[#allocation8 + $0x181]] }
  0x4c   :  { %v129_v29 = vadd.f32 %v128_v23, %v125_v22  ;;  %v121_v33 = vadd.f32 %v120_v21, %v118_v25  ;;  %v146_v34 = vstv %s469_s6  ;;  %v157_v39 = vstv %s476_s17  ;;  %s507_s24 = sld [smem:[#allocation8 + $0x182]]  ;;  %s509_s25 = sld [smem:[#allocation8 + $0x183]] }
  0x4d   :  { %v111_v32 = vmax.f32 %v110_v24, 0.0  ;;  %v154_v35 = vstv %s474_s16  ;;  %v136_v37 = vmul.f32 %v135_v27, %v100_v28  ;;  %v161_v43 = vstv %s479_s0  ;;  %s515_s26 = sld [smem:[#allocation9 + $0x2]]  ;;  %s517_s27 = sld [smem:[#allocation11]] }
  0x4e   :  { %v132_v36 = vadd.f32 %v131_v26, %v129_v29  ;;  %v155_v38 = vmul.f32 %v154_v35, %v100_v28  ;;  %v122_v40 = vmax.f32 %v121_v33, 0.0  ;;  %v150_v45 = vstv %s471_s15  ;;  %s520_s28 = sld [smem:[#allocation11 + $0x1]]  ;;  %s526_s29 = sld [smem:[#allocation9 + $0x3]] }
  0x4f   :  { %v139_v41 = vmul.f32 %v138_v30, %v111_v32  ;;  %v158_v42 = vmul.f32 %v157_v39, %v111_v32  ;;  %v165_v46 = vstv %s481_s2  ;;  %v173_v47 = vstv %s485_s18  ;;  %s528_s30 = sld [smem:[#allocation11 + $0x2]]  ;;  %s283_s8 = sld [smem:[#allocation11 + $0x3]] }
  0x50   :  { %v133_v44 = vmax.f32 %v132_v36, 0.0  ;;  %v143_v49 = vmul.f32 %v142_v31, %v122_v40  ;;  %v162_v51 = vmul.f32 %v161_v43, %v122_v40  ;;  %v174_v54 = vmul.f32 %v173_v47, %v100_v28  ;;  %s389_s3 = smov [#allocation12]  }
  0x51   :  { %v140_v48 = vadd.f32 %v139_v41, %v136_v37  ;;  %v159_v50 = vadd.f32 %v158_v42, %v155_v38  ;;  %v176_v55 = vstv %s488_s19  ;;  %v180_v59 = vstv %s494_s21  ;;  %s241_s10 = sshll.u32 %s389_s3, 4  ;;  %s242_s10 = int_to_ptr.vmem [resolvable:$true] %s241_s10 }
  0x52   :  { %v147_v52 = vmul.f32 %v146_v34, %v133_v44  ;;  %v166_v53 = vmul.f32 %v165_v46, %v133_v44  ;;  %v177_v58 = vmul.f32 %v176_v55, %v111_v32  ;;  %v169_v60 = vstv %s492_s20  ;;  %s354_s11 = scalar_lea.vmem %s242_s10, 64  ;;  %p359_p12 = scmp.lt.s32.totalorder %s242_s10, %s242_s10 }
  0x53   :  { %v144_v56 = vadd.f32 %v143_v49, %v140_v48  ;;  %v163_v57 = vadd.f32 %v162_v51, %v159_v50  ;;  %v181_v61 = vmul.f32 %v180_v59, %v122_v40  ;;  %v184_v62 = vstv %s498_s22  ;;  %p355_p11 = scmp.ne.s32.totalorder %s242_s10, %s354_s11  ;;  %p360_p13 = scmp.lt.s32.totalorder %s354_s11, %s354_s11 }
  0x54   :  { %v192_v63 = vstv %s500_s23  ;;  %v178_v2 = vadd.f32 %v177_v58, %v174_v54  ;;  %v185_v3 = vmul.f32 %v184_v62, %v133_v44  ;;  %v195_v5 = vstv %s504_s4 }
  0x55   :  { %v148_v0 = vadd.f32 %v147_v52, %v144_v56  ;;  %v167_v1 = vadd.f32 %v166_v53, %v163_v57  ;;  %v193_v4 = vmul.f32 %v192_v63, %v100_v28  ;;  %v199_v6 = vstv %s507_s24  ;;  %p361_p0 = por %p360_p13, %p359_p12 }
  0x56   :  { %v203_v7 = vstv %s509_s25  ;;  %v182_v10 = vadd.f32 %v181_v61, %v178_v2  ;;  %v196_v11 = vmul.f32 %v195_v5, %v111_v32  ;;  %v188_v12 = vstv %s515_s26 }
  0x57   :  { %v151_v8 = vadd.f32 %v150_v45, %v148_v0  ;;  %v170_v9 = vadd.f32 %v169_v60, %v167_v1  ;;  %v200_v13 = vmul.f32 %v199_v6, %v122_v40  ;;  %v204_v14 = vmul.f32 %v203_v7, %v133_v44  ;;  %p362_p1 = pnand %p361_p0, %p355_p11 }
  0x58   :  { %v211_v15 = vstv %s517_s27  ;;  %v186_v18 = vadd.f32 %v185_v3, %v182_v10  ;;  %v197_v19 = vadd.f32 %v196_v11, %v193_v4  ;;  %v214_v20 = vstv %s520_s28 }
  0x59   :  { %v152_v16 = vmax.f32 %v151_v8, 0.0  ;;  %v171_v17 = vmax.f32 %v170_v9, 0.0  ;;  %v207_v25 = vstv %s526_s29  ;;  %v218_v26 = vstv %s528_s30 }
  0x5a   :  { %v189_v21 = vadd.f32 %v188_v12, %v186_v18  ;;  %v201_v22 = vadd.f32 %v200_v13, %v197_v19  ;;  %v222_v32 = vstv %s283_s8  ;;  %v226_v36 = vstv %s558_s5 }
  0x5b   :  { %v212_v23 = vmul.f32 %v211_v15, %v152_v16  ;;  %v215_v24 = vmul.f32 %v214_v20, %v171_v17 }
  0x5c   :  { %v190_v27 = vmax.f32 %v189_v21, 0.0  ;;  %v205_v28 = vadd.f32 %v204_v14, %v201_v22 }
  0x5d   :  { %v216_v29 = vadd.f32 %v215_v24, %v212_v23 }
  0x5e   :  { %v208_v30 = vadd.f32 %v207_v25, %v205_v28  ;;  %v219_v31 = vmul.f32 %v218_v26, %v190_v27 }
  0x60   :  { %v209_v33 = vmax.f32 %v208_v30, 0.0  ;;  %v220_v34 = vadd.f32 %v219_v31, %v216_v29 }
  0x62   :  { %v223_v35 = vmul.f32 %v222_v32, %v209_v33 }
  0x64   :  { %v224_v37 = vadd.f32 %v223_v35, %v220_v34 }
  0x66   :  { %v227_v38 = vadd.f32 %v226_v36, %v224_v37 }
  0x68   :  { %v228_v39 = vsub.f32 0.0, %v227_v38 }
  0x6a   :  { %v229_v40 = vmul.f32 1.442695, %v228_v39 }
  0x6c   :  { %290 = vpow2.f32 %v229_v40 }
  0x76   :  { %v291_v41 = vpop.eup %290 }
  0x77   :  { %v231_v42 = vadd.f32 1.0, %v291_v41 }
  0x79   :  { %292 = vrcp.f32 %v231_v42 }
  0x83   :  { %v293_v43 = vpop.eup %292 }
  0x84   :  { %234 = vst [vmem:[#allocation12] sm:$0xf] %v293_v43 }
  0x85   :  { %365 = shalt.err (!%p362_p1)
}
  0x86   :  { %s366_s13 = scalar_lea.hbm %s560_s7, 64 }
  0x87   :  { %p367_p2 = scmp.ne.s32.totalorder %s560_s7, %s366_s13  ;;  %p370_p3 = scmp.lt.u32.totalorder %s366_s13, %s560_s7 }
  0x89   :  { %p372_p4 = pnand %p370_p3, %p367_p2 }
  0x8b   :  { %375 = shalt.err (!%p372_p4)
}
  0x8c   :  { %244 = dma.vmem_to_hbm [thread:$0]  %s242_s10, 64, %s560_s7, [#allocation4]  }
  0x8d   :  { %382 = dma.done.wait [#allocation4], 64  }
  0x8e   :  { %383 = vsyncadd [#allocation4], 4294967232 }
  0x8f   :  { %248 = vsyncpa [#allocation4], 1 }
  0x90   :  { %249 = vsyncpa [#allocation5], 1 }
  0x91   :  { %250 = vsyncpa [#allocation7], 1 }
  0x92   :  { %251 = vsyncpa [#allocation10], 1 }

</bundles_post_ra>
